<compile_context>
chip_gen: v7x
topology: tpu7x:2x2x1
jax: 0.10.0
libtpu: 0.0.40
codegen_flags: <defaults>
</compile_context>

<pallas_src>
import math

import jax
import jax.numpy as jnp
from jax.experimental import pallas as pl
from jax.experimental.pallas import tpu as pltpu


def _discriminator_kernel(x_ref, w1_ref, b1_ref, w2_ref, b2_ref, o_ref):
    # Layer 1: Linear(img_dim -> 128) on the MXU, bf16 operands / f32 accumulate.
    x = x_ref[...]
    w1 = w1_ref[...]
    if x.dtype != jnp.bfloat16:
        x = x.astype(jnp.bfloat16)          # v5e: keep the MXU off the f32 path
    if w1.dtype != jnp.bfloat16:
        w1 = w1.astype(jnp.bfloat16)
    h = jnp.dot(x, w1, preferred_element_type=jnp.float32)   # (tile_b, 128) f32
    h = h + b1_ref[...]                      # (tile_b, 128) + (1, 128) broadcast
    # LeakyReLU(negative_slope=0.1)
    h = jnp.maximum(h, 0.1 * h)
    # Layer 2: Linear(128 -> 1).  A (tile_b,128)@(128,1) matmul would occupy a
    # single MXU output column; do a VPU multiply + XLU lane reduction against
    # the (1,128) weight row instead — these slots are free under the HBM stream.
    z = jnp.sum(h * w2_ref[...], axis=-1, keepdims=True)      # (tile_b, 1) f32
    z = z + b2_ref[0, 0]                     # scalar bias from SMEM
    # Sigmoid (EUP)
    o_ref[...] = jax.nn.sigmoid(z).astype(o_ref.dtype)


def discriminator_forward(x, w1, b1, w2, b2, *, tile_b=2048,
                          vmem_limit_bytes=32 * 1024 * 1024):
    """x: (B, img_dim); returns (B, 1) f32 = sigmoid(leaky_relu(x@W1+b1)@W2+b2).

    w1: (img_dim, 128), b1: (1, 128), w2: (128, 1), b2: (1, 1).
    x / w1 may be bf16 (recommended: halves HBM traffic) or f32.
    """
    B, D = x.shape
    H = w1.shape[1]   # 128
    O = w2.shape[1]   # 1

    # Layer-2 weights as a lane-dense (1, H) row for the VPU/XLU path; b2 scalar.
    w2_row = w2.reshape(1, H)
    b2_s = b2.reshape(1, 1).astype(jnp.float32)

    # Batch tile: single full-extent block for small B, otherwise a multiple of
    # 8 sublanes (2048 default).  Ragged last tile handled by Pallas masking —
    # no padded copy of x is ever materialized.
    if tile_b >= B:
        tile_b = B
    else:
        tile_b = max(8, (tile_b // 8) * 8)

    grid = (pl.cdiv(B, tile_b),)

    bytes_accessed = int(
        x.size * x.dtype.itemsize
        + w1.size * w1.dtype.itemsize
        + b1.size * b1.dtype.itemsize
        + w2.size * w2.dtype.itemsize
        + b2.size * b2.dtype.itemsize
        + B * O * 4
    )
    cost = pl.CostEstimate(
        flops=2 * B * D * H + 2 * B * H,
        transcendentals=B * O,
        bytes_accessed=bytes_accessed,
    )

    out = pl.pallas_call(
        _discriminator_kernel,
        out_shape=jax.ShapeDtypeStruct((B, O), jnp.float32),
        grid=grid,
        in_specs=[
            pl.BlockSpec((tile_b, D), lambda i: (i, 0)),           # x: pipelined per-tile
            pl.BlockSpec((D, H), lambda i: (0, 0)),                # W1: resident
            pl.BlockSpec((1, H), lambda i: (0, 0)),                # b1: resident
            pl.BlockSpec((1, H), lambda i: (0, 0)),                # w2 row: resident
            pl.BlockSpec(memory_space=pltpu.MemorySpace.SMEM),     # b2: scalar in SMEM
        ],
        out_specs=pl.BlockSpec((tile_b, O), lambda i: (i, 0)),     # contiguous writeback
        compiler_params=pltpu.CompilerParams(
            dimension_semantics=("parallel",),       # shard batch across TCs on v7x
            vmem_limit_bytes=vmem_limit_bytes,
        ),
        cost_estimate=cost,
    )(x, w1, b1, w2_row, b2_s)

    return out


def init_discriminator_params(key, img_dim, hidden=128, out=1):
    """Deterministic init mimicking PyTorch nn.Linear default (uniform ±1/sqrt(fan_in))."""
    k1, k2, k3, k4 = jax.random.split(key, 4)
    bound1 = 1.0 / math.sqrt(img_dim)
    bound2 = 1.0 / math.sqrt(hidden)
    w1 = jax.random.uniform(k1, (img_dim, hidden), jnp.float32, -bound1, bound1)
    b1 = jax.random.uniform(k2, (1, hidden), jnp.float32, -bound1, bound1)
    w2 = jax.random.uniform(k3, (hidden, out), jnp.float32, -bound2, bound2)
    b2 = jax.random.uniform(k4, (1, out), jnp.float32, -bound2, bound2)
    return w1, b1, w2, b2


def _reference_forward(x, w1, b1, w2, b2):
    h = x @ w1 + b1
    h = jnp.where(h > 0, h, 0.1 * h)
    z = h @ w2 + b2
    return jax.nn.sigmoid(z)


if __name__ == "__main__":
    # MNIST-like: img_dim = 28*28 = 784; small batch for the self-test.
    B, IMG_DIM = 8, 784

    key = jax.random.PRNGKey(0)
    kx, kp = jax.random.split(key)
    x_f32 = jax.random.normal(kx, (B, IMG_DIM), dtype=jnp.float32)
    w1, b1, w2, b2 = init_discriminator_params(kp, IMG_DIM)

    # Caller-level dtype decision (per perf review): stream x / W1 as bf16 to
    # halve HBM traffic of the memory-bound input stream; biases / layer-2
    # weight stay f32 (tiny, resident).  MXU accumulation is f32 either way.
    x_bf16 = x_f32.astype(jnp.bfloat16)
    w1_bf16 = w1.astype(jnp.bfloat16)

    out = discriminator_forward(x_bf16, w1_bf16, b1, w2, b2)
    out = jax.block_until_ready(out)

    # Reference: identical bf16-rounded inputs, full f32 math (only the MXU
    # accumulation order differs -> tight tolerance still holds).
    ref = _reference_forward(x_bf16.astype(jnp.float32),
                             w1_bf16.astype(jnp.float32), b1, w2, b2)
    assert out.shape == (B, 1), out.shape
    assert jnp.allclose(out, ref, atol=1e-4, rtol=1e-4), "mismatch vs reference"

    print("KERNEL_OK")
</pallas_src>

<mosaic_0001>
module attributes {stable_mosaic.version = 11 : i64} {
  func.func @_discriminator_kernel(%arg0: i32, %arg1: memref<8x784xbf16, #tpu.memory_space<vmem>>, %arg2: memref<784x128xbf16, #tpu.memory_space<vmem>>, %arg3: memref<1x128xf32, #tpu.memory_space<vmem>>, %arg4: memref<1x128xf32, #tpu.memory_space<vmem>>, %arg5: memref<1x1xf32, #tpu.memory_space<smem>>, %arg6: memref<8x1xf32, #tpu.memory_space<vmem>>) attributes {dimension_semantics = [#tpu.dimension_semantics<parallel>], iteration_bounds = array<i64: 1>, scalar_prefetch = 0 : i64, scratch_operands = 0 : i64, tpu.core_type = #tpu.core_type<tc>, window_params = [{transform_indices = @transform_0, window_bounds = array<i64: 8, 784>}, {pipeline_mode = #tpu.pipeline_mode<synchronous>, transform_indices = @transform_1, window_bounds = array<i64: 784, 128>}, {pipeline_mode = #tpu.pipeline_mode<synchronous>, transform_indices = @transform_2, window_bounds = array<i64: 1, 128>}, {pipeline_mode = #tpu.pipeline_mode<synchronous>, transform_indices = @transform_3, window_bounds = array<i64: 1, 128>}, {transform_indices = @transform_4, window_bounds = array<i64: 1, 1>}, {transform_indices = @transform_5, window_bounds = array<i64: 8, 1>}]} {
    %c0 = arith.constant 0 : index
    %c0_0 = arith.constant 0 : index
    %0 = vector.load %arg1[%c0, %c0_0] : memref<8x784xbf16, #tpu.memory_space<vmem>>, vector<8x784xbf16>
    %c0_1 = arith.constant 0 : index
    %c0_2 = arith.constant 0 : index
    %1 = vector.load %arg2[%c0_1, %c0_2] : memref<784x128xbf16, #tpu.memory_space<vmem>>, vector<784x128xbf16>
    %cst = arith.constant dense<0.000000e+00> : vector<8x128xf32>
    %2 = tpu.matmul %0, %1, %cst {dimension_numbers = #tpu.dot_dimension_numbers<[1], [0], [0], [1], [0, 0, 1, 1], [], []>} : vector<8x784xbf16>, vector<784x128xbf16>, vector<8x128xf32> -> vector<8x128xf32>
    %c0_3 = arith.constant 0 : index
    %c0_4 = arith.constant 0 : index
    %3 = vector.load %arg3[%c0_3, %c0_4] : memref<1x128xf32, #tpu.memory_space<vmem>>, vector<1x128xf32>
    %4 = vector.broadcast %3 : vector<1x128xf32> to vector<8x128xf32>
    %5 = arith.addf %2, %4 : vector<8x128xf32>
    %cst_5 = arith.constant 1.000000e-01 : f32
    %6 = vector.broadcast %cst_5 : f32 to vector<8x128xf32>
    %7 = arith.mulf %6, %5 : vector<8x128xf32>
    %8 = arith.maximumf %5, %7 : vector<8x128xf32>
    %c0_6 = arith.constant 0 : index
    %c0_7 = arith.constant 0 : index
    %9 = vector.load %arg4[%c0_6, %c0_7] : memref<1x128xf32, #tpu.memory_space<vmem>>, vector<1x128xf32>
    %10 = vector.broadcast %9 : vector<1x128xf32> to vector<8x128xf32>
    %11 = arith.mulf %8, %10 : vector<8x128xf32>
    %cst_8 = arith.constant dense<0.000000e+00> : vector<8xf32>
    %12 = vector.multi_reduction <add>, %11, %cst_8 [1] : vector<8x128xf32> to vector<8xf32>
    %13 = vector.shape_cast %12 : vector<8xf32> to vector<8x1xf32>
    %c0_9 = arith.constant 0 : index
    %c0_10 = arith.constant 0 : index
    %14 = memref.load %arg5[%c0_9, %c0_10] : memref<1x1xf32, #tpu.memory_space<smem>>
    %15 = vector.broadcast %14 : f32 to vector<8x1xf32>
    %16 = arith.addf %13, %15 : vector<8x1xf32>
    %17 = arith.negf %16 : vector<8x1xf32>
    %18 = math.exp %17 : vector<8x1xf32>
    %cst_11 = arith.constant 1.000000e+00 : f32
    %19 = vector.broadcast %cst_11 : f32 to vector<8x1xf32>
    %20 = arith.addf %19, %18 : vector<8x1xf32>
    %21 = arith.divf %19, %20 : vector<8x1xf32>
    %c0_12 = arith.constant 0 : index
    %c0_13 = arith.constant 0 : index
    %22 = vector.load %arg6[%c0_12, %c0_13] : memref<8x1xf32, #tpu.memory_space<vmem>>, vector<8x1xf32>
    tpu.vector_store %arg6[%c0_12, %c0_13], %21 {strides = array<i32>} : memref<8x1xf32, #tpu.memory_space<vmem>>, vector<8x1xf32>,
    return
  }
  func.func @transform_0(%arg0: i32) -> (i32, i32) {
    %c0_i32 = arith.constant 0 : i32
    %c0_i32_0 = arith.constant 0 : i32
    return %arg0, %c0_i32 : i32, i32
  }
  func.func @transform_1(%arg0: i32) -> (i32, i32) {
    %c0_i32 = arith.constant 0 : i32
    %c0_i32_0 = arith.constant 0 : i32
    %c0_i32_1 = arith.constant 0 : i32
    return %c0_i32, %c0_i32_0 : i32, i32
  }
  func.func @transform_2(%arg0: i32) -> (i32, i32) {
    %c0_i32 = arith.constant 0 : i32
    %c0_i32_0 = arith.constant 0 : i32
    %c0_i32_1 = arith.constant 0 : i32
    return %c0_i32, %c0_i32_0 : i32, i32
  }
  func.func @transform_3(%arg0: i32) -> (i32, i32) {
    %c0_i32 = arith.constant 0 : i32
    %c0_i32_0 = arith.constant 0 : i32
    %c0_i32_1 = arith.constant 0 : i32
    return %c0_i32, %c0_i32_0 : i32, i32
  }
  func.func @transform_4(%arg0: i32) -> (i32, i32) {
    %c0_i32 = arith.constant 0 : i32
    %c0_i32_0 = arith.constant 0 : i32
    %c0_i32_1 = arith.constant 0 : i32
    return %c0_i32, %c0_i32_0 : i32, i32
  }
  func.func @transform_5(%arg0: i32) -> (i32, i32) {
    %c0_i32 = arith.constant 0 : i32
    %c0_i32_0 = arith.constant 0 : i32
    return %arg0, %c0_i32 : i32, i32
  }
}

</mosaic_0001>

<bundles_post_ra>
// kernel: tpu_custom_call.1
= control target key start
LH: loop header
LB: loop body
LE: loop exit
PB: predicated region body
PF: predicated region fallthrough
CT: control target
= control target key end

     0   :  { %11 = vsyncpa [#allocation4], 0  ;;  %s995_s0 = inlined_call_operand.hbm [shape: bf16[8,784], index: 0, kind: input, shape index: {}]   ;;  %s996_s1 = inlined_call_operand.hbm [shape: bf16[784,128], index: 1, kind: input, shape index: {}]   ;;  %s997_s2 = inlined_call_operand.vmem [shape: f32[1,128], index: 2, kind: input, shape index: {}]   ;;  %s998_s3 = inlined_call_operand.vmem [shape: f32[1,128], index: 3, kind: input, shape index: {}]   ;;  %s999_s4 = inlined_call_operand.<no memory space> [shape: f32[1,1], index: 4, kind: input, shape index: {}]   ;;  %s1000_s5 = inlined_call_operand.vmem [shape: f32[8,1], index: 5, kind: output, shape index: {}]  }
   0x1   :  { %12 = vsyncpa [#allocation6], 0  ;;  %s916_s18 = smov [#allocation3]   ;;  %s917_s20 = smov [#allocation5]  }
   0x2   :  { %s19_s19 = sshll.u32 %s916_s18, 4  ;;  %s28_s21 = sshll.u32 %s917_s20, 4  ;;  %s20_s19 = int_to_ptr.vmem [resolvable:$true] %s19_s19  ;;  %s952_s21 = int_to_ptr.vmem [resolvable:$true] %s28_s21 }
   0x3   :  { %s868_s24 = scalar_lea.hbm %s995_s0, 448 }
   0x4   :  { %p869_p0 = scmp.ne.s32.totalorder %s995_s0, %s868_s24  ;;  %p872_p1 = scmp.lt.u32.totalorder %s868_s24, %s995_s0 }
   0x6   :  { %p874_p2 = pnand %p872_p1, %p869_p0 }
   0x8   :  { %877 = shalt.err (!%p874_p2)
}
   0x9   :  { %s878_s29 = scalar_lea.vmem %s20_s19, 448  ;;  %p883_p4 = scmp.lt.s32.totalorder %s20_s19, %s20_s19 }
   0xa   :  { %p879_p3 = scmp.ne.s32.totalorder %s20_s19, %s878_s29  ;;  %p884_p5 = scmp.lt.s32.totalorder %s878_s29, %s878_s29 }
   0xc   :  { %p885_p6 = por %p884_p5, %p883_p4 }
   0xe   :  { %p886_p7 = pnand %p885_p6, %p879_p3 }
  0x10   :  { %889 = shalt.err (!%p886_p7)
}
  0x11   :  { %22 = dma.hbm_to_vmem [thread:$0]  %s995_s0, 448, %s20_s19, [#allocation4]  }
  0x12   :  { %s890_s9 = scalar_lea.hbm %s996_s1, 6272 }
  0x13   :  { %p891_p8 = scmp.ne.s32.totalorder %s996_s1, %s890_s9  ;;  %p894_p9 = scmp.lt.u32.totalorder %s890_s9, %s996_s1 }
  0x15   :  { %p896_p10 = pnand %p894_p9, %p891_p8 }
  0x17   :  { %899 = shalt.err (!%p896_p10)
}
  0x18   :  { %s900_s14 = scalar_lea.vmem %s952_s21, 6272  ;;  %p905_p12 = scmp.lt.s32.totalorder %s952_s21, %s952_s21 }
  0x19   :  { %p901_p11 = scmp.ne.s32.totalorder %s952_s21, %s900_s14  ;;  %p906_p13 = scmp.lt.s32.totalorder %s900_s14, %s900_s14 }
  0x1b   :  { %p907_p0 = por %p906_p13, %p905_p12 }
  0x1d   :  { %p908_p1 = pnand %p907_p0, %p901_p11 }
  0x1f   :  { %911 = shalt.err (!%p908_p1)
}
  0x20   :  { %s918_s0 = smov 64   ;;  %s919_s15 = smov 4  }
  0x21   :  { %34 = dma.hbm_to_vmem [thread:$0]  %s996_s1, 6272, %s952_s21, [#allocation6], %s918_s0, %s918_s0, %s919_s15  }
  0x22   :  { %912 = dma.done.wait [#allocation4], 448  }
  0x23   :  { %913 = vsyncadd [#allocation4], 4294966848 }
  0x24   :  { %914 = dma.done.wait [#allocation6], 6272  }
  0x25   :  { %915 = vsyncadd [#allocation6], 4294961024  ;;  %v808_v0 = vld [vmem:[#allocation5 + $0x40] sm:$0xff]   ;;  %v812_v4 = vld [vmem:[#allocation5 + $0x48] sm:$0xff]   ;;  %v920_v43 = vmov 0.0   ;;  %vm921_vm0 = vmmov 0  }
  0x26   :  { %v809_v1 = vld [vmem:[#allocation5] sm:$0xff]   ;;  %728 = vmatprep.subr.bf16.mxu0 %v808_v0  ;;  %v813_v5 = vld [vmem:[#allocation5 + $0x8] sm:$0xff]   ;;  %v816_v8 = vld [vmem:[#allocation5 + $0x50] sm:$0xff]   ;;  %vm475_vm1 = vcmask 130048   ;;  %vm660_vm2 = vcmask 7168  }
  0x27   :  { %v810_v2 = vld [vmem:[#allocation5 + $0xc0] sm:$0xff]   ;;  %729 = vmatpush3.bf16.msra.mxu0 %v809_v1  ;;  %v814_v6 = vld [vmem:[#allocation5 + $0xc8] sm:$0xff]   ;;  %v817_v9 = vld [vmem:[#allocation5 + $0x10] sm:$0xff]  }
  0x28   :  { %v811_v3 = vld [vmem:[#allocation5 + $0x80] sm:$0xff]   ;;  %750 = vmatprep.subr.bf16.mxu1 %v810_v2  ;;  %730 = vmatprep.subr.bf16.mxu0 %v812_v4  ;;  %v815_v7 = vld [vmem:[#allocation5 + $0x88] sm:$0xff]   ;;  %v818_v10 = vld [vmem:[#allocation5 + $0xd0] sm:$0xff]  }
  0x29   :  { %751 = vmatpush3.bf16.msra.mxu1 %v811_v3  ;;  %v819_v11 = vld [vmem:[#allocation5 + $0x90] sm:$0xff]   ;;  %v820_v12 = vld [vmem:[#allocation5 + $0x58] sm:$0xff]   ;;  %v824_v16 = vld [vmem:[#allocation5 + $0x60] sm:$0xff]  }
  0x2a   :  { %752 = vmatprep.subr.bf16.mxu1 %v814_v6  ;;  %v821_v13 = vld [vmem:[#allocation5 + $0x18] sm:$0xff]   ;;  %v825_v17 = vld [vmem:[#allocation5 + $0x20] sm:$0xff]   ;;  %v828_v20 = vld [vmem:[#allocation5 + $0x68] sm:$0xff]  }
  0x2b   :  { %731 = vmatpush3.bf16.msra.mxu0 %v813_v5  ;;  %v822_v14 = vld [vmem:[#allocation5 + $0xd8] sm:$0xff]   ;;  %v826_v18 = vld [vmem:[#allocation5 + $0xe0] sm:$0xff]   ;;  %v829_v21 = vld [vmem:[#allocation5 + $0x28] sm:$0xff]  }
  0x2c   :  { %732 = vmatprep.subr.bf16.mxu0 %v816_v8  ;;  %v823_v15 = vld [vmem:[#allocation5 + $0x98] sm:$0xff]   ;;  %v827_v19 = vld [vmem:[#allocation5 + $0xa0] sm:$0xff]   ;;  %v830_v22 = vld [vmem:[#allocation5 + $0xe8] sm:$0xff]  }
  0x2d   :  { %753 = vmatpush3.bf16.msra.mxu1 %v815_v7  ;;  %v831_v23 = vld [vmem:[#allocation5 + $0xa8] sm:$0xff]   ;;  %v832_v24 = vld [vmem:[#allocation5 + $0x70] sm:$0xff]   ;;  %v836_v28 = vld [vmem:[#allocation5 + $0x78] sm:$0xff]  }
  0x2e   :  { %754 = vmatprep.subr.bf16.mxu1 %v818_v10  ;;  %v833_v25 = vld [vmem:[#allocation5 + $0x30] sm:$0xff]   ;;  %v837_v29 = vld [vmem:[#allocation5 + $0x38] sm:$0xff]   ;;  %v48_v31 = vld [vmem:[#allocation3] sm:$0xff] }
  0x2f   :  { %733 = vmatpush3.bf16.msra.mxu0 %v817_v9  ;;  %v834_v26 = vld [vmem:[#allocation5 + $0xf0] sm:$0xff]   ;;  %v838_v30 = vld [vmem:[#allocation5 + $0xf8] sm:$0xff]   ;;  %v669_v32 = vcombine.low %v48_v31, %v48_v31  ;;  %v670_v33 = vcombine.high %v48_v31, %v48_v31  ;;  %v842_v35 = vld [vmem:[#allocation5 + $0x140] sm:$0xff]  }
  0x30   :  { %734 = vmatprep.subr.bf16.mxu0 %v820_v12  ;;  %v835_v27 = vld [vmem:[#allocation5 + $0xb0] sm:$0xff]   ;;  %v841_v34 = vld [vmem:[#allocation5 + $0xb8] sm:$0xff]   ;;  %v845_v39 = vld [vmem:[#allocation5 + $0x100] sm:$0xff]  }
  0x31   :  { %755 = vmatpush3.bf16.msra.mxu1 %v819_v11  ;;  %v49_v36 = vld [vmem:[#allocation3 + $0x8] sm:$0xff]  ;;  %511 = vmatprep.mubr.bf16.mxu0 %v670_v33  ;;  %v850_v45 = vld [vmem:[#allocation5 + $0x158] sm:$0xff]   ;;  %v852_v47 = vld [vmem:[#allocation5 + $0x160] sm:$0xff]  }
  0x32   :  { %756 = vmatprep.subr.bf16.mxu1 %v822_v14  ;;  %v671_v37 = vcombine.low %v49_v36, %v49_v36  ;;  %v672_v38 = vcombine.high %v49_v36, %v49_v36  ;;  %v846_v40 = vld [vmem:[#allocation5 + $0x148] sm:$0xff]   ;;  %v848_v42 = vld [vmem:[#allocation5 + $0x150] sm:$0xff]   ;;  %v851_v46 = vld [vmem:[#allocation5 + $0x118] sm:$0xff]  }
  0x33   :  { %735 = vmatpush3.bf16.msra.mxu0 %v821_v13  ;;  %v847_v41 = vld [vmem:[#allocation5 + $0x108] sm:$0xff]   ;;  %v849_v44 = vld [vmem:[#allocation5 + $0x110] sm:$0xff]   ;;  %v853_v48 = vld [vmem:[#allocation5 + $0x120] sm:$0xff]  }
  0x34   :  { %736 = vmatprep.subr.bf16.mxu0 %v824_v16  ;;  %551 = vmatprep.mubr.bf16.mxu1 %v672_v38  ;;  %v854_v49 = vld [vmem:[#allocation5 + $0x168] sm:$0xff]   ;;  %v860_v50 = vld [vmem:[#allocation5 + $0x180] sm:$0xff]   ;;  %v50_v51 = vld [vmem:[#allocation3 + $0x10] sm:$0xff] }
  0x35   :  { %757 = vmatpush3.bf16.msra.mxu1 %v823_v15  ;;  %v674_v52 = vcombine.high %v50_v51, %v50_v51  ;;  %v863_v53 = vld [vmem:[#allocation3 + $0x18] ss:$0 sps:$4 sm:$0xff]   ;;  %v855_v54 = vld [vmem:[#allocation5 + $0x128] sm:$0xff]   ;;  %v856_v55 = vld [vmem:[#allocation5 + $0x170] sm:$0xff]   ;;  %v673_v59 = vcombine.low %v50_v51, %v50_v51 }
  0x36   :  { %758 = vmatprep.subr.bf16.mxu1 %v826_v18  ;;  %v857_v56 = vld [vmem:[#allocation5 + $0x130] sm:$0xff]   ;;  %v858_v57 = vld [vmem:[#allocation5 + $0x178] sm:$0xff]   ;;  %v668_v61 = vld [vmem:[%s997_s2] ss:$0 sm:$0xff] }
  0x37   :  { %737 = vmatpush3.bf16.msra.mxu0 %v825_v17  ;;  %v859_v58 = vld [vmem:[#allocation5 + $0x138] sm:$0xff]  }
  0x38   :  { %738 = vmatprep.subr.bf16.mxu0 %v828_v20 }
  0x39   :  { %759 = vmatpush3.bf16.msra.mxu1 %v827_v19 }
  0x3a   :  { %760 = vmatprep.subr.bf16.mxu1 %v830_v22 }
  0x3b   :  { %739 = vmatpush3.bf16.msra.mxu0 %v829_v21  ;;  %v726_v21 = vld [vmem:[%s998_s3] ss:$0 sm:$0xff] }
  0x3c   :  { %740 = vmatprep.subr.bf16.mxu0 %v832_v24  ;;  %v652_v24 = vstv %s999_s4 }
  0x3d   :  { %761 = vmatpush3.bf16.msra.mxu1 %v831_v23 }
  0x3e   :  { %762 = vmatprep.subr.bf16.mxu1 %v834_v26 }
  0x3f   :  { %741 = vmatpush3.bf16.msra.mxu0 %v833_v25 }
  0x40   :  { %742 = vmatprep.subr.bf16.mxu0 %v836_v28 }
  0x41   :  { %763 = vmatpush3.bf16.msra.mxu1 %v835_v27 }
  0x42   :  { %764 = vmatprep.subr.bf16.mxu1 %v838_v30 }
  0x43   :  { %743 = vmatpush3.bf16.msra.mxu0 %v837_v29 }
  0x44   :  { %772 = vmatprep.subr.bf16.mxu0 %v842_v35 }
  0x45   :  { %765 = vmatpush3.bf16.msra.mxu1 %v841_v34 }
  0x46   :  { %512 = vmatmul.mubr.bf16.vlgmr.msra.gmra.mrb[0].mxu0 %v669_v32  ;;  %796 = vmatprep.subr.bf16.mxu1 %v920_v43 }
  0x47   :  { %773 = vmatpush3.bf16.msra.mxu0 %v845_v39  ;;  %591 = vmatprep.mubr.bf16.mxu0 %v674_v52 }
  0x48   :  { %552 = vmatmul.mubr.bf16.vlgmr.msra.gmra.mrb[0].mxu1 %v671_v37  ;;  %774 = vmatprep.subr.bf16.mxu0 %v846_v40 }
  0x49   :  { %798 = vmatprep.mubr.msk.bf16.mxu1 %vm921_vm0, %v920_v43  ;;  %797 = vmatpush3.bf16.msra.mxu1 %v860_v50 }
  0x4b   :  { %775 = vmatpush3.bf16.msra.mxu0 %v847_v41 }
  0x4c   :  { %776 = vmatprep.subr.bf16.mxu0 %v848_v42 }
  0x4f   :  { %777 = vmatpush3.bf16.msra.mxu0 %v849_v44 }
  0x50   :  { %778 = vmatprep.subr.bf16.mxu0 %v850_v45  ;;  %799 = vmatmul.mubr.msk.bf16.vlgmr.msra.gmra.mrb[4].mxu1 %vm475_vm1, %v863_v53 }
  0x53   :  { %779 = vmatpush3.bf16.msra.mxu0 %v851_v46 }
  0x54   :  { %780 = vmatprep.subr.bf16.mxu0 %v852_v47 }
  0x57   :  { %781 = vmatpush3.bf16.msra.mxu0 %v853_v48 }
  0x58   :  { %782 = vmatprep.subr.bf16.mxu0 %v854_v49 }
  0x5b   :  { %783 = vmatpush3.bf16.msra.mxu0 %v855_v54 }
  0x5c   :  { %784 = vmatprep.subr.bf16.mxu0 %v856_v55 }
  0x5f   :  { %785 = vmatpush3.bf16.msra.mxu0 %v857_v56 }
  0x60   :  { %786 = vmatprep.subr.bf16.mxu0 %v858_v57 }
  0x63   :  { %787 = vmatpush3.bf16.msra.mxu0 %v859_v58 }
  0x66   :  { %592 = vmatmul.mubr.bf16.vlgmr.msra.gmra.mrb[4].mxu0 %v673_v59 }
 0x119   :  { %v744_v60 = vpop.f32.mrb[0].mxu0 }
 0x11a   :  { %v745_v62 = vpop.f32.mrb[1].mxu0 }
 0x11b   :  { %v746_v63 = vadd.f32 %v745_v62, %v744_v60  ;;  %v747_v0 = vpop.f32.mrb[2].mxu0  ;;  %v766_v1 = vpop.f32.mrb[0].mxu1 }
 0x11c   :  { %v748_v2 = vpop.f32.mrb[3].mxu0  ;;  %v767_v3 = vpop.f32.mrb[1].mxu1 }
 0x11d   :  { %v514_v4 = vadd.f32 %v746_v63, %v668_v61  ;;  %v768_v5 = vadd.f32 %v767_v3, %v766_v1  ;;  %v769_v6 = vpop.f32.mrb[2].mxu1 }
 0x11e   :  { %v770_v7 = vpop.f32.mrb[3].mxu1 }
 0x11f   :  { %v554_v8 = vadd.f32 %v768_v5, %v514_v4 }
 0x123   :  { %v633_v9 = vpop.f32.mrb[4].mxu1 }
 0x124   :  { %v800_v10 = vpop.f32.mrb[5].mxu1 }
 0x125   :  { %v636_v11 = vpop.f32.mrb[6].mxu1 }
 0x126   :  { %v801_v12 = vpop.f32.mrb[7].mxu1 }
 0x139   :  { %v788_v13 = vpop.f32.mrb[4].mxu0 }
 0x13a   :  { %v789_v14 = vpop.f32.mrb[5].mxu0 }
 0x13b   :  { %v790_v15 = vadd.f32 %v789_v14, %v788_v13  ;;  %v791_v16 = vpop.f32.mrb[6].mxu0 }
 0x13c   :  { %v792_v17 = vpop.f32.mrb[7].mxu0 }
 0x13d   :  { %v594_v18 = vadd.f32 %v790_v15, %v554_v8 }
 0x13f   :  { %v634_v19 = vadd.f32 %v633_v9, %v594_v18 }
 0x141   :  { %v639_v20 = vmul.f32 0.1, %v634_v19 }
 0x143   :  { %v640_v22 = vmax.f32 %v634_v19, %v639_v20 }
 0x145   :  { %v648_v23 = vmul.f32 %v726_v21, %v640_v22 }
 0x147   :  { %649 = vadd.xlane.f32.xlu0 %v648_v23 }
 0x1d4   :  { %v650_v25 = vpop.xlane.xlu0 %649 }
 0x1d5   :  { %v653_v26 = vadd.f32 %v652_v24, %v650_v25 }
 0x1d7   :  { %v727_v27 = vmul.f32 -1.442695, %v653_v26 }
 0x1d9   :  { %864 = vpow2.f32 %v727_v27 }
 0x1e3   :  { %v865_v28 = vpop.eup %864 }
 0x1e4   :  { %v657_v29 = vadd.f32 1.0, %v865_v28 }
 0x1e6   :  { %866 = vrcp.f32 %v657_v29 }
 0x1f0   :  { %v867_v30 = vpop.eup %866 }
 0x1f1   :  { %661 = vst.msk [vmem:[%s1000_s5] sm:$0xff] %vm660_vm2, %v867_v30 }
 0x1f2   :  { %666 = vsyncpa [#allocation4], 1 }
 0x1f3   :  { %667 = vsyncpa [#allocation6], 1 }

</bundles_post_ra>
